<compile_context>
chip_gen: v7x
topology: tpu7x:2x2x1
jax: 0.10.0
libtpu: 0.0.40
codegen_flags: <defaults>
</compile_context>

<pallas_src>
import jax
import jax.numpy as jnp
from jax.experimental import pallas as pl
from jax.experimental.pallas import tpu as pltpu


def _round_up(x, m):
    return ((x + m - 1) // m) * m


# ---------------------------------------------------------------------------
# Pallas kernel (one M-tile per grid step):
#   out_T = relu(x2_T - (W_T @ patches_T + b))
#     w_ref  : (O, K_pad)   resident
#     b_ref  : (O, 1)       resident
#     p_ref  : (K_pad, TM)  patches tile (lane axis = M, dense)
#     x2_ref : (O, TM)
#     o_ref  : (O, TM)      lane-dense output tile
# ---------------------------------------------------------------------------
def conv_sub_relu_kernel(w_ref, b_ref, p_ref, x2_ref, o_ref):
    conv = jnp.dot(w_ref[...], p_ref[...],
                   preferred_element_type=jnp.float32) + b_ref[...]
    o_ref[...] = jnp.maximum(x2_ref[...] - conv, 0.0)


def conv_sub_relu_t(w_t, bias, patches_t, x2_t, tm):
    O, K_pad = w_t.shape
    _, M_pad = patches_t.shape
    assert M_pad % tm == 0
    grid = (M_pad // tm,)

    cost = pl.CostEstimate(
        flops=2 * M_pad * K_pad * O,
        transcendentals=0,
        bytes_accessed=4 * (M_pad * K_pad + K_pad * O + 2 * M_pad * O),
    )

    return pl.pallas_call(
        conv_sub_relu_kernel,
        out_shape=jax.ShapeDtypeStruct((O, M_pad), jnp.float32),
        grid_spec=pltpu.PrefetchScalarGridSpec(
            num_scalar_prefetch=0,
            grid=grid,
            in_specs=[
                pl.BlockSpec((O, K_pad), lambda i: (0, 0)),   # weight, resident
                pl.BlockSpec((O, 1), lambda i: (0, 0)),       # bias, resident
                pl.BlockSpec((K_pad, tm), lambda i: (0, i)),  # patches tile
                pl.BlockSpec((O, tm), lambda i: (0, i)),      # x2 tile
            ],
            out_specs=pl.BlockSpec((O, tm), lambda i: (0, i)),
        ),
        compiler_params=pltpu.CompilerParams(
            dimension_semantics=("parallel",)),
        cost_estimate=cost,
    )(w_t, bias, patches_t, x2_t)


# ---------------------------------------------------------------------------
# Module wrapper: im2col / padding / layout plumbing stays in plain JAX.
# ---------------------------------------------------------------------------
def model_forward(x1_nchw, x2_nchw, w_oikk, b_o,
                  stride=2, padding=1, tm_max=512):
    N, Cin, H, W = x1_nchw.shape
    O, _, KH, KW = w_oikk.shape
    OH = (H + 2 * padding - KH) // stride + 1
    OW = (W + 2 * padding - KW) // stride + 1
    M = N * OH * OW
    K = Cin * KH * KW

    # tile / pad sizes
    K_pad = _round_up(K, 128)
    TM = min(tm_max, _round_up(M, 128))
    M_pad = _round_up(M, TM)

    # NCHW -> NHWC, spatial zero-pad
    x1 = jnp.transpose(x1_nchw, (0, 2, 3, 1))
    xp = jnp.pad(x1, ((0, 0), (padding, padding), (padding, padding), (0, 0)))

    # im2col, K ordered as (kh, kw, c)
    cols = []
    for kh in range(KH):
        for kw in range(KW):
            sl = xp[:, kh:kh + stride * OH:stride,
                       kw:kw + stride * OW:stride, :]
            cols.append(sl[:, :OH, :OW, :])
    patches = jnp.concatenate(cols, axis=-1).reshape(M, K)       # (M, K)

    # transposed + zero-padded operands (lane axis = M, K padded to 128)
    patches_t = jnp.pad(patches.T, ((0, K_pad - K), (0, M_pad - M)))   # (K_pad, M_pad)

    # weight (O, Cin, KH, KW) -> (O, K) in (kh, kw, c) order, then pad K
    w_t = jnp.transpose(w_oikk, (0, 2, 3, 1)).reshape(O, K)
    w_t = jnp.pad(w_t, ((0, 0), (0, K_pad - K)))                       # (O, K_pad)
    bias = b_o.reshape(O, 1)

    # x2 must match the conv output shape; present it transposed: (O, M_pad)
    x2_t = jnp.transpose(x2_nchw, (1, 0, 2, 3)).reshape(O, M)
    x2_t = jnp.pad(x2_t, ((0, 0), (0, M_pad - M)))

    out_t = conv_sub_relu_t(w_t, bias, patches_t, x2_t, TM)       # (O, M_pad)

    # back to NCHW
    out = out_t[:, :M].reshape(O, N, OH, OW)
    return jnp.transpose(out, (1, 0, 2, 3))


if __name__ == "__main__":
    key = jax.random.PRNGKey(0)
    k1, k2, kw, kb = jax.random.split(key, 4)

    # Shapes consistent with the module: Conv2d(3, 8, 5, stride=2, pad=1)
    N, Cin, H, W = 2, 3, 32, 32
    Cout, KH, KW = 8, 5, 5
    OH = (H + 2 * 1 - KH) // 2 + 1   # = 15
    OW = (W + 2 * 1 - KW) // 2 + 1   # = 15

    x1 = jax.random.normal(k1, (N, Cin, H, W), dtype=jnp.float32)
    # NOTE: original script's x2 (1,3,64,64) is not broadcastable with the conv
    # output; x2 is given the conv-output shape so x2 - conv(x1) is well defined.
    x2 = jax.random.normal(k2, (N, Cout, OH, OW), dtype=jnp.float32)

    # Deterministic PyTorch-style uniform init
    fan_in = Cin * KH * KW
    bound = 1.0 / (fan_in ** 0.5)
    w = jax.random.uniform(kw, (Cout, Cin, KH, KW), jnp.float32, -bound, bound)
    b = jax.random.uniform(kb, (Cout,), jnp.float32, -bound, bound)

    # tm_max=256 -> M = 450, M_pad = 512, grid = (2,): exercises M tiling,
    # pipelining, and the "parallel" grid axis even at this small size.
    out = model_forward(x1, x2, w, b, tm_max=256)
    jax.block_until_ready(out)

    # sanity check against pure-JAX reference
    ref_conv = jax.lax.conv_general_dilated(
        x1, w, window_strides=(2, 2), padding=((1, 1), (1, 1)),
        dimension_numbers=("NCHW", "OIHW", "NCHW")) + b.reshape(1, Cout, 1, 1)
    ref = jnp.maximum(x2 - ref_conv, 0.0)
    assert out.shape == (N, Cout, OH, OW)
    assert jnp.allclose(out, ref, atol=1e-4, rtol=1e-4)

    print("KERNEL_OK")
</pallas_src>

<mosaic_0001>
module attributes {stable_mosaic.version = 11 : i64} {
  func.func @conv_sub_relu_kernel(%arg0: i32, %arg1: memref<8x128xf32, #tpu.memory_space<vmem>>, %arg2: memref<8x1xf32, #tpu.memory_space<vmem>>, %arg3: memref<128x256xf32, #tpu.memory_space<vmem>>, %arg4: memref<8x256xf32, #tpu.memory_space<vmem>>, %arg5: memref<8x256xf32, #tpu.memory_space<vmem>>) attributes {dimension_semantics = [#tpu.dimension_semantics<parallel>], iteration_bounds = array<i64: 2>, scalar_prefetch = 0 : i64, scratch_operands = 0 : i64, tpu.core_type = #tpu.core_type<tc>, window_params = [{pipeline_mode = #tpu.pipeline_mode<synchronous>, transform_indices = @transform_0, window_bounds = array<i64: 8, 128>}, {pipeline_mode = #tpu.pipeline_mode<synchronous>, transform_indices = @transform_1, window_bounds = array<i64: 8, 1>}, {transform_indices = @transform_2, window_bounds = array<i64: 128, 256>}, {transform_indices = @transform_3, window_bounds = array<i64: 8, 256>}, {transform_indices = @transform_4, window_bounds = array<i64: 8, 256>}]} {
    %c0 = arith.constant 0 : index
    %c0_0 = arith.constant 0 : index
    %0 = vector.load %arg1[%c0, %c0_0] : memref<8x128xf32, #tpu.memory_space<vmem>>, vector<8x128xf32>
    %c0_1 = arith.constant 0 : index
    %c0_2 = arith.constant 0 : index
    %1 = vector.load %arg3[%c0_1, %c0_2] : memref<128x256xf32, #tpu.memory_space<vmem>>, vector<128x256xf32>
    %cst = arith.constant dense<0.000000e+00> : vector<8x256xf32>
    %2 = tpu.matmul %0, %1, %cst {dimension_numbers = #tpu.dot_dimension_numbers<[1], [0], [0], [1], [0, 0, 1, 1], [], []>} : vector<8x128xf32>, vector<128x256xf32>, vector<8x256xf32> -> vector<8x256xf32>
    %c0_3 = arith.constant 0 : index
    %c0_4 = arith.constant 0 : index
    %3 = vector.load %arg2[%c0_3, %c0_4] : memref<8x1xf32, #tpu.memory_space<vmem>>, vector<8x1xf32>
    %4 = vector.broadcast %3 : vector<8x1xf32> to vector<8x256xf32>
    %5 = arith.addf %2, %4 : vector<8x256xf32>
    %c0_5 = arith.constant 0 : index
    %c0_6 = arith.constant 0 : index
    %6 = vector.load %arg4[%c0_5, %c0_6] : memref<8x256xf32, #tpu.memory_space<vmem>>, vector<8x256xf32>
    %7 = arith.subf %6, %5 : vector<8x256xf32>
    %cst_7 = arith.constant 0.000000e+00 : f32
    %8 = vector.broadcast %cst_7 : f32 to vector<8x256xf32>
    %9 = arith.maximumf %7, %8 : vector<8x256xf32>
    %c0_8 = arith.constant 0 : index
    %c0_9 = arith.constant 0 : index
    %10 = vector.load %arg5[%c0_8, %c0_9] : memref<8x256xf32, #tpu.memory_space<vmem>>, vector<8x256xf32>
    tpu.vector_store %arg5[%c0_8, %c0_9], %9 {strides = array<i32>} : memref<8x256xf32, #tpu.memory_space<vmem>>, vector<8x256xf32>,
    return
  }
  func.func @transform_0(%arg0: i32) -> (i32, i32) {
    %c0_i32 = arith.constant 0 : i32
    %c0_i32_0 = arith.constant 0 : i32
    %c0_i32_1 = arith.constant 0 : i32
    return %c0_i32, %c0_i32_0 : i32, i32
  }
  func.func @transform_1(%arg0: i32) -> (i32, i32) {
    %c0_i32 = arith.constant 0 : i32
    %c0_i32_0 = arith.constant 0 : i32
    %c0_i32_1 = arith.constant 0 : i32
    return %c0_i32, %c0_i32_0 : i32, i32
  }
  func.func @transform_2(%arg0: i32) -> (i32, i32) {
    %c0_i32 = arith.constant 0 : i32
    %c0_i32_0 = arith.constant 0 : i32
    return %c0_i32, %arg0 : i32, i32
  }
  func.func @transform_3(%arg0: i32) -> (i32, i32) {
    %c0_i32 = arith.constant 0 : i32
    %c0_i32_0 = arith.constant 0 : i32
    return %c0_i32, %arg0 : i32, i32
  }
  func.func @transform_4(%arg0: i32) -> (i32, i32) {
    %c0_i32 = arith.constant 0 : i32
    %c0_i32_0 = arith.constant 0 : i32
    return %c0_i32, %arg0 : i32, i32
  }
}

</mosaic_0001>

<bundles_post_ra>
// kernel: tpu_custom_call.1
= control target key start
LH: loop header
LB: loop body
LE: loop exit
PB: predicated region body
PF: predicated region fallthrough
CT: control target
= control target key end

     0   :  { %9 = vsyncpa [#allocation3], 0  ;;  %s1013_s0 = inlined_call_operand.vmem [shape: f32[8,128], index: 0, kind: input, shape index: {}]   ;;  %s1014_s1 = inlined_call_operand.vmem [shape: f32[8,1], index: 1, kind: input, shape index: {}]   ;;  %s1015_s2 = inlined_call_operand.hbm [shape: f32[128,512], index: 2, kind: input, shape index: {}]   ;;  %s1016_s3 = inlined_call_operand.hbm [shape: f32[8,512], index: 3, kind: input, shape index: {}]   ;;  %s1017_s4 = inlined_call_operand.hbm [shape: f32[8,512], index: 4, kind: output, shape index: {}]  }
   0x1   :  { %11 = vsyncpa [#allocation3 + $0x1], 0 }
   0x2   :  { %12 = vsyncpa [#allocation6], 0 }
   0x3   :  { %14 = vsyncpa [#allocation6 + $0x1], 0 }
   0x4   :  { %15 = vsyncpa [#allocation4], 0 }
   0x5   :  { %17 = vsyncpa [#allocation4 + $0x1], 0  ;;  %s758_s15 = smov 0   ;;  %s760_s16 = smov 0  }
   0x6   :  { %s762_s17 = smov 0   ;;  %s764_s18 = smov 0  }
   0x7 LB: > { %s779_s19 = sadd.s32 4294967295, %s723_s18   ;;  %s483_s20 = sadd.s32 4294967294, %s723_s18   ;;  %s723_s18 = sphi %s764_s18, %s1035_s18   ;;  %s719_s17 = sphi %s762_s17, %s1034_s17   ;;  %s715_s16 = sphi %s760_s16, %s1033_s16   ;;  %s711_s15 = sphi %s758_s15, %s1032_s15  }
   0x8   : > { %s783_s21 = sadd.s32 1, %s723_s18   ;;  %s72_s22 = sadd.s32 1, %s719_s17 }
   0x9   : > { %s69_s23 = ssub.s32 %s723_s18, %s783_s21  ;;  %p79_p0 = scmp.ne.s32.totalorder %s719_s17, %s715_s16 }
   0xa   : > { %p70_p1 = scmp.eq.s32.totalorder %s69_s23, 0  ;;  %p80_p2 = scmp.eq.s32.totalorder %s723_s18, 0 }
   0xb   : > { %p85_p3 = scmp.ne.s32.totalorder %s715_s16, %s711_s15  ;;  %p86_p4 = scmp.eq.s32.totalorder %s779_s19, 0 }
   0xc   : > { %s795_s24 = scalar_select %p70_p1, %s719_s17, %s72_s22  }
   0xd   : > { %p797_p5 = por %p80_p2, %p79_p0  ;;  %p801_p6 = por %p86_p4, %p85_p3 }
   0xe   : > { %p135_p7 = scmp.eq.s32.totalorder %s779_s19, 1  ;;  %p141_p8 = scmp.eq.s32.totalorder %s483_s20, 1 }
   0xf   : > { %s1021_s26 = scalar_select %p801_p6, 1, 0 }
  0x10   : > { %p553_p10 = scmp.lt.s32.totalorder %s723_s18, 2  ;;  %p808_p11 = por %p135_p7, %p79_p0 }
  0x11   : > { %p812_p12 = por %p141_p8, %p85_p3  ;;  %s817_s29 = sand.u32 1, %s719_s17  }
  0x12   : > { %s1022_s27 = scalar_select %p808_p11, 1, 0 }
  0x13   : > { %s1023_s28 = scalar_select %p812_p12, 1, 0 }
  0x14   : > { %s501_s30 = sshll.u32 %s723_s18, 8  ;;  %s486_s5 = sshll.u32 %s817_s29, 8 }
  0x15   : > { %s826_s8 = scalar_lea.hbm %s1015_s2, %s501_s30  ;;  %s171_s9 = scalar_lea.vmem [#allocation2], %s486_s5 }
  0x16   : > { %s178_s10 = sshll.u32 %s171_s9, 4  ;;  %p830_p13 = pnand %p553_p10, %p797_p5  ;;  %s834_s10 = int_to_ptr.vmem [resolvable:$true] %s178_s10 }
  0x17   : > { %s168_s12 = scalar_lea.sflag [#allocation3], %s817_s29  ;;  %s593_s13 = scalar_lea.hbm %s826_s8, 4096 }
  0x18   : > { %p594_p1 = scmp.ne.s32.totalorder %s826_s8, %s593_s13  ;;  %p595_p2 = pneg %p830_p13 }
  0x19   : > { %s598_s22 = scalar_lea.hbm %s1015_s2, 8192  ;;  %p599_p5 = scmp.lt.u32.totalorder %s826_s8, %s1015_s2 }
  0x1a   : > { %p596_p3 = pnand %p595_p2, %p594_p1  ;;  %p600_p7 = scmp.lt.u32.totalorder %s598_s22, %s593_s13 }
  0x1b   : > { %p602_p10 = scmp.lt.u32.totalorder %s593_s13, %s826_s8 }
  0x1c   : > { %p597_p4 = pneg %p596_p3  ;;  %p601_p8 = por %p600_p7, %p599_p5 }
  0x1e   : > { %p603_p9 = por %p602_p10, %p601_p8 }
  0x20   : > { %p604_p0 = pnand %p603_p9, %p597_p4 }
  0x22   : > { %607 = shalt.err (!%p604_p0)
}
  0x23   : > { %s608_s5 = scalar_lea.vmem %s834_s10, 4096  ;;  %s725_s6 = smov [#allocation2]  }
  0x24   : > { %p609_p1 = scmp.ne.s32.totalorder %s834_s10, %s608_s5  ;;  %s613_s7 = sshll.u32 %s725_s6, 4  ;;  %s614_s7 = int_to_ptr.vmem [resolvable:$false] %s613_s7 }
  0x25   : > { %s615_s9 = scalar_lea.vmem %s614_s7, 8192  ;;  %p616_p11 = scmp.lt.s32.totalorder %s834_s10, %s614_s7 }
  0x26   : > { %p611_p3 = pnand %p609_p1, %p595_p2  ;;  %p617_p5 = scmp.lt.s32.totalorder %s615_s9, %s608_s5 }
  0x28   : > { %p612_p12 = pneg %p611_p3  ;;  %p618_p7 = por %p617_p5, %p616_p11 }
  0x2a   : > { %p619_p8 = pnand %p618_p7, %p612_p12 }
  0x2c   : > { %622 = shalt.err (!%p619_p8)
}
  0x2d   : > { %s726_s13 = smov 512   ;;  %s727_s14 = smov 256  }
  0x2e   : > { %s728_s20 = smov 16   ;;  %p205_p9 = scmp.lt.s32.totalorder %s723_s18, 3 }
  0x2f   : > { %545 = dma.hbm_to_vmem [thread:$0]  (!%p830_p13), %s826_s8, 4096, %s834_s10, %s168_s12, %s726_s13, %s727_s14, %s728_s20  }
  0x30   : > { %s489_s22 = sshll.u32 %s817_s29, 4  ;;  %s872_s5 = scalar_lea.hbm %s1016_s3, %s501_s30 }
  0x31   : > { %p1025_p11 = scmp.ge.s32.totalorder %s723_s18, 1  ;;  %s192_s7 = scalar_lea.vmem [#allocation5], %s489_s22 }
  0x32   : > { %s200_s9 = sshll.u32 %s192_s7, 4  ;;  %s189_s8 = scalar_lea.sflag [#allocation6], %s817_s29  ;;  %s201_s9 = int_to_ptr.vmem [resolvable:$true] %s200_s9 }
  0x33   : > { %p876_p12 = pnand %p1025_p11, %p205_p9  ;;  %s623_s10 = scalar_lea.hbm %s872_s5, 256 }
  0x34   : > { %p624_p0 = scmp.ne.s32.totalorder %s872_s5, %s623_s10  ;;  %s628_s13 = scalar_lea.hbm %s1016_s3, 512 }
  0x35   : > { %s1026_s6 = scalar_select %p876_p12, 1, 0 }
  0x36   : > { %p626_p4 = pnand %p624_p0, %p595_p2  ;;  %p629_p1 = scmp.lt.u32.totalorder %s872_s5, %s1016_s3 }
  0x37   : > { %p630_p3 = scmp.lt.u32.totalorder %s628_s13, %s623_s10  ;;  %p632_p7 = scmp.lt.u32.totalorder %s623_s10, %s872_s5 }
  0x38   : > { %p627_p10 = pneg %p626_p4 }
  0x39   : > { %p631_p5 = por %p630_p3, %p629_p1 }
  0x3b   : > { %p633_p8 = por %p632_p7, %p631_p5 }
  0x3d   : > { %p634_p9 = pnand %p633_p8, %p627_p10 }
  0x3f   : > { %637 = shalt.err (!%p634_p9)
}
  0x40   : > { %s638_s29 = scalar_lea.vmem %s201_s9, 256  ;;  %s729_s22 = smov [#allocation5]  }
  0x41   : > { %p639_p11 = scmp.ne.s32.totalorder %s201_s9, %s638_s29  ;;  %s643_s23 = sshll.u32 %s729_s22, 4  ;;  %s644_s23 = int_to_ptr.vmem [resolvable:$false] %s643_s23 }
  0x42   : > { %s645_s25 = scalar_lea.vmem %s644_s23, 512  ;;  %p646_p6 = scmp.lt.s32.totalorder %s201_s9, %s644_s23 }
  0x43   : > { %p641_p0 = pnand %p639_p11, %p595_p2  ;;  %p647_p12 = scmp.lt.s32.totalorder %s645_s25, %s638_s29 }
  0x45   : > { %p642_p4 = pneg %p641_p0  ;;  %p648_p1 = por %p647_p12, %p646_p6 }
  0x47   : > { %p649_p3 = pnand %p648_p1, %p642_p4 }
  0x49   : > { %652 = shalt.err (!%p649_p3)
}
  0x4a   : > { %548 = dma.hbm_to_vmem [thread:$0]  (!%p830_p13), %s872_s5, 256, %s201_s9, %s189_s8  }
  0x4b   : > { %p1027_p10 = scmp.ne.s32.totalorder %s1026_s6, 0 }
  0x4c   : > { %s903_s7 = sand.u32 (!%p1027_p10), 1, %s715_s16   ;;  %p1028_p6 = scmp.ne.s32.totalorder (!%p1027_p10), %s1021_s26, 0 }
  0x4d   : > { %209 = sbr.rel (%p1027_p10) target bundleno = 356 (0x164), region = 36  ;;  %s493_s10 = sshll.u32 (!%p1027_p10), %s903_s7, 8 }
  0x4e   : > { %s212_s30 = scalar_lea.sflag (!%p1027_p10), [#allocation3], %s903_s7  ;;  %s907_s12 = scalar_lea.vmem (!%p1027_p10), [#allocation2], %s493_s10 }
  0x54   : > { %698 = dma.done.wait (%p1028_p6), %s212_s30, 4096  }
  0x55   : > { %700 = vsyncadd (%p1028_p6), %s212_s30, 4294963200  ;;  %s494_s11 = sshll.u32 %s903_s7, 4  ;;  %s221_s5 = scalar_lea.sflag [#allocation6], %s903_s7 }
  0x56   : > { %s917_s6 = scalar_lea.vmem [#allocation5], %s494_s11 }
  0x57   : > { %702 = dma.done.wait (%p1028_p6), %s221_s5, 256  }
  0x58   : > { %704 = vsyncadd (%p1028_p6), %s221_s5, 4294967040  ;;  %v730_v0 = vmov 0.0   ;;  %v731_v1 = vmov 0   ;;  %v259_v2 = vld [vmem:[%s907_s12 + $0x8] sm:$0xff]  ;;  %v261_v3 = vld [vmem:[%s907_s12 + $0x18] sm:$0xff]  ;;  %s503_s14 = sshll.u32 %s779_s19, 8 }
  0x59   : > { %360 = vmatprep.mubr.f32.mxu0 %v730_v0  ;;  %592 = vset.pattern.permute.xlu0 %v731_v1  ;;  %v258_v4 = vld [vmem:[%s907_s12] sm:$0xff]  ;;  %v504_v5 = vpack.c.bf16 %v261_v3, %v259_v2  ;;  %v260_v6 = vld [vmem:[%s907_s12 + $0x10] sm:$0xff]  ;;  %v263_v7 = vld [vmem:[%s907_s12 + $0x28] sm:$0xff]  ;;  %s253_s20 = scalar_lea.vmem [#allocation7], %s494_s11  ;;  %s969_s25 = scalar_lea.hbm %s1017_s4, %s503_s14 }
  0x5a   : > { %v265_v8 = vld [vmem:[%s907_s12 + $0x38] sm:$0xff]  ;;  %v506_v9 = vpack.c.bf16 %v260_v6, %v258_v4  ;;  %v262_v11 = vld [vmem:[%s907_s12 + $0x20] sm:$0xff]  ;;  %v264_v12 = vld [vmem:[%s907_s12 + $0x30] sm:$0xff]  ;;  %s390_s29 = sshll.u32 %s253_s20, 4  ;;  %s376_s10 = scalar_lea.sflag [#allocation4], %s903_s7  ;;  %s971_s29 = int_to_ptr.vmem [resolvable:$true] %s390_s29 }
  0x5b   : > { %v508_v10 = vpack.c.bf16 %v265_v8, %v263_v7  ;;  %v267_v13 = vld [vmem:[%s907_s12 + $0x48] sm:$0xff]  ;;  %505 = vmatprep.subr.bf16.mxu0 %v504_v5  ;;  %v269_v14 = vld [vmem:[%s907_s12 + $0x58] sm:$0xff]  ;;  %v510_v15 = vpack.c.bf16 %v264_v12, %v262_v11  ;;  %v266_v17 = vld [vmem:[%s907_s12 + $0x40] sm:$0xff]  ;;  %s653_s19 = scalar_lea.vmem %s971_s29, 256  ;;  %p1029_p2 = scmp.ne.s32.totalorder %s1022_s27, 0 }
  0x5c   : > { %507 = vmatpush1.bf16.msra.mxu0 %v506_v9  ;;  %v512_v16 = vpack.c.bf16 %v269_v14, %v267_v13  ;;  %v268_v18 = vld [vmem:[%s907_s12 + $0x50] sm:$0xff]  ;;  %v271_v19 = vld [vmem:[%s907_s12 + $0x68] sm:$0xff]  ;;  %v273_v20 = vld [vmem:[%s907_s12 + $0x78] sm:$0xff]  ;;  %p654_p13 = scmp.ne.s32.totalorder %s971_s29, %s653_s19  ;;  %s732_s30 = smov [#allocation7]  }
  0x5d   : > { %509 = vmatprep.subr.bf16.mxu0 %v508_v10  ;;  %v514_v21 = vpack.c.bf16 %v268_v18, %v266_v17  ;;  %v516_v22 = vpack.c.bf16 %v273_v20, %v271_v19  ;;  %v270_v23 = vld [vmem:[%s907_s12 + $0x60] sm:$0xff]  ;;  %v272_v24 = vld [vmem:[%s907_s12 + $0x70] sm:$0xff]  ;;  %v275_v25 = vld [vmem:[%s907_s12 + $0x88] sm:$0xff] }
  0x5e   : > { %v277_v26 = vld [vmem:[%s907_s12 + $0x98] sm:$0xff]  ;;  %v290_v27 = vld [vmem:[%s1014_s1] sm:$0xff]  ;;  %v518_v28 = vpack.c.bf16 %v272_v24, %v270_v23  ;;  %v276_v31 = vld [vmem:[%s907_s12 + $0x90] sm:$0xff]  ;;  %p655_p12 = pnand %p654_p13, %p1029_p2 }
  0x5f   : > { %293 = vperm.xlu0 %592, %v290_v27   ;;  %v520_v29 = vpack.c.bf16 %v277_v26, %v275_v25  ;;  %v274_v30 = vld [vmem:[%s907_s12 + $0x80] sm:$0xff]  ;;  %v279_v32 = vld [vmem:[%s907_s12 + $0xa8] sm:$0xff]  ;;  %v281_v33 = vld [vmem:[%s907_s12 + $0xb8] sm:$0xff] }
  0x60   : > { %511 = vmatpush1.bf16.msra.mxu0 %v510_v15  ;;  %v522_v34 = vpack.c.bf16 %v276_v31, %v274_v30  ;;  %v524_v35 = vpack.c.bf16 %v281_v33, %v279_v32  ;;  %v278_v36 = vld [vmem:[%s907_s12 + $0xa0] sm:$0xff]  ;;  %v280_v37 = vld [vmem:[%s907_s12 + $0xb0] sm:$0xff]  ;;  %v283_v38 = vld [vmem:[%s907_s12 + $0xc8] sm:$0xff]  ;;  %p656_p5 = pneg %p655_p12 }
  0x61   : > { %513 = vmatprep.subr.bf16.mxu0 %v512_v16  ;;  %v285_v39 = vld [vmem:[%s907_s12 + $0xd8] sm:$0xff]  ;;  %v526_v40 = vpack.c.bf16 %v280_v37, %v278_v36  ;;  %v282_v42 = vld [vmem:[%s907_s12 + $0xc0] sm:$0xff]  ;;  %v284_v43 = vld [vmem:[%s907_s12 + $0xd0] sm:$0xff] }
  0x62   : > { %v528_v41 = vpack.c.bf16 %v285_v39, %v283_v38  ;;  %v287_v44 = vld [vmem:[%s907_s12 + $0xe8] sm:$0xff]  ;;  %v289_v45 = vld [vmem:[%s907_s12 + $0xf8] sm:$0xff]  ;;  %v530_v46 = vpack.c.bf16 %v284_v43, %v282_v42  ;;  %v286_v48 = vld [vmem:[%s907_s12 + $0xe0] sm:$0xff] }
  0x63   : > { %v532_v47 = vpack.c.bf16 %v289_v45, %v287_v44  ;;  %v288_v49 = vld [vmem:[%s907_s12 + $0xf0] sm:$0xff]  ;;  %v257_v51 = vld [vmem:[%s1013_s0] sm:$0xff]  ;;  %v368_v57 = vld [vmem:[%s917_s6 + $0x8] sm:$0xff]  ;;  %s657_s12 = sshll.u32 %s732_s30, 4  ;;  %s658_s12 = int_to_ptr.vmem [resolvable:$false] %s657_s12 }
  0x64   : > { %515 = vmatpush1.bf16.msra.mxu0 %v514_v21  ;;  %v534_v50 = vpack.c.bf16 %v288_v49, %v286_v48  ;;  %v367_v54 = vld [vmem:[%s917_s6] sm:$0xff]  ;;  %s659_s11 = scalar_lea.vmem %s658_s12, 512  ;;  %p660_p7 = scmp.lt.s32.totalorder %s971_s29, %s658_s12 }
  0x65   : > { %517 = vmatprep.subr.bf16.mxu0 %v516_v22  ;;  %p661_p8 = scmp.lt.s32.totalorder %s659_s11, %s653_s19 }
  0x67   : > { %p662_p9 = por %p661_p8, %p660_p7 }
  0x68   : > { %519 = vmatpush1.bf16.msra.mxu0 %v518_v28 }
  0x69   : > { %521 = vmatprep.subr.bf16.mxu0 %v520_v29  ;;  %p663_p11 = pnand %p662_p9, %p656_p5 }
  0x6c   : > { %523 = vmatpush1.bf16.msra.mxu0 %v522_v34 }
  0x6d   : > { %525 = vmatprep.subr.bf16.mxu0 %v524_v35 }
  0x70   : > { %527 = vmatpush1.bf16.msra.mxu0 %v526_v40 }
  0x71   : > { %529 = vmatprep.subr.bf16.mxu0 %v528_v41 }
  0x74   : > { %531 = vmatpush1.bf16.msra.mxu0 %v530_v46 }
  0x75   : > { %533 = vmatprep.subr.bf16.mxu0 %v532_v47 }
  0x78   : > { %535 = vmatpush1.bf16.msra.mxu0 %v534_v50 }
  0x7b   : > { %361 = vmatmul.mubr.f32.vlgmr.msra.gmra.mrb[0].mxu0 %v257_v51 }
  0xde   : > { %v294_v52 = vpop.permute.xlu0 %293 }
 0x14e   : > { %v362_v53 = vpop.f32.mrb[0].mxu0 }
 0x14f   : > { %v363_v55 = vadd.f32 %v362_v53, %v294_v52  ;;  %v364_v56 = vpop.f32.mrb[1].mxu0 }
 0x150   : > { %v365_v58 = vadd.f32 %v364_v56, %v294_v52 }
 0x151   : > { %v369_v59 = vsub.f32 %v367_v54, %v363_v55 }
 0x152   : > { %v370_v60 = vsub.f32 %v368_v57, %v365_v58 }
 0x153   : > { %v371_v61 = vmax.f32 %v369_v59, 0.0 }
 0x154   : > { %v372_v62 = vmax.f32 %v370_v60, 0.0 }
 0x155   : > { %373 = vst [vmem:[%s253_s20] sm:$0xff] %v371_v61 }
 0x156   : > { %374 = vst [vmem:[%s253_s20 + $0x8] sm:$0xff] %v372_v62 }
 0x157   : > { %666 = shalt.err (!%p663_p11)
}
 0x158   : > { %s667_s7 = scalar_lea.hbm %s969_s25, 256  ;;  %s671_s26 = scalar_lea.hbm %s1017_s4, 512 }
 0x159   : > { %p668_p0 = scmp.ne.s32.totalorder %s969_s25, %s667_s7  ;;  %p672_p3 = scmp.lt.u32.totalorder %s969_s25, %s1017_s4 }
 0x15a   : > { %p673_p10 = scmp.lt.u32.totalorder %s671_s26, %s667_s7  ;;  %p675_p13 = scmp.lt.u32.totalorder %s667_s7, %s969_s25 }
 0x15b   : > { %p669_p4 = pnand %p668_p0, %p1029_p2 }
 0x15c   : > { %p674_p6 = por %p673_p10, %p672_p3 }
 0x15d   : > { %p670_p1 = pneg %p669_p4 }
 0x15e   : > { %p676_p12 = por %p675_p13, %p674_p6 }
 0x160   : > { %p677_p5 = pnand %p676_p12, %p670_p1 }
 0x162   : > { %680 = shalt.err (!%p677_p5)
}
 0x163   : > { %540 = dma.vmem_to_hbm [thread:$0]  (%p1029_p2), %s971_s29, 256, %s969_s25, %s376_s10  }
 0x164 PF: > { %s402_s13 = sand.u32 1, %s711_s15   ;;  %p1030_p7 = scmp.ne.s32.totalorder %s1023_s28, 0 }
 0x165   : > { %p1031_p8 = scmp.ge.s32.totalorder %s723_s18, 2  ;;  %s403_s14 = scalar_lea.sflag [#allocation4], %s402_s13 }
 0x167   : > { %p550_p9 = pnand %p1031_p8, %p1030_p7 }
 0x169   : > { %706 = dma.done.wait (!%p550_p9), %s403_s14, 256  }
 0x16a   : > { %708 = vsyncadd (!%p550_p9), %s403_s14, 4294967040  ;;  %p20_p11 = scmp.ge.s32.totalorder %s783_s21, 4   ;;  %s1032_s15 = smov %s715_s16 }
 0x16b   : > { %s1033_s16 = smov %s719_s17  ;;  %s1034_s17 = smov %s795_s24 }
 0x16c   : > { %s1035_s18 = smov %s783_s21  ;;  %22 = sbr.rel (!%p20_p11) target bundleno = 7 (0x7), region = 94 }
 0x173   :  { %408 = vsyncpa [#allocation3], 1 }
 0x174   :  { %410 = vsyncpa [#allocation3 + $0x1], 1 }
 0x175   :  { %411 = vsyncpa [#allocation6], 1 }
 0x176   :  { %413 = vsyncpa [#allocation6 + $0x1], 1 }
 0x177   :  { %414 = vsyncpa [#allocation4], 1 }
 0x178   :  { %416 = vsyncpa [#allocation4 + $0x1], 1 }

</bundles_post_ra>
